<compile_context>
chip_gen: v6e
topology: v6e:2x2x1
jax: 0.10.0
libtpu: 0.0.40
codegen_flags: <defaults>
</compile_context>

<pallas_src>
import jax
import jax.numpy as jnp
from jax.experimental import pallas as pl
from jax.experimental.pallas import tpu as pltpu

_LANE = 128   # vreg lane width
_SUB = 8      # vreg sublane count (min row-tile granularity)
_HIDDEN = 10


def adder_kernel(x_ref, w1_ref, b1_ref, w2_ref, b2_ref, o_ref):
    # x_ref: (2, TR, 128) VMEM  -- two lane-dense feature planes
    # w1_ref: (20,) SMEM  (fc1.weight flattened row-major: [w[j,0], w[j,1], ...])
    # b1_ref: (10,) SMEM, w2_ref: (10,) SMEM, b2_ref: (1,) SMEM
    # o_ref: (TR, 128) VMEM
    x0 = x_ref[0]                       # (TR, 128)
    x1 = x_ref[1]                       # (TR, 128)

    acc = jnp.zeros(x0.shape, jnp.float32)
    for j in range(_HIDDEN):            # fully unrolled; all scalar-splat VPU ops
        h = jnp.maximum(w1_ref[2 * j] * x0 + w1_ref[2 * j + 1] * x1 + b1_ref[j],
                        0.0)
        acc = acc + w2_ref[j] * h
    o_ref[...] = (acc + b2_ref[0]).astype(o_ref.dtype)


def adder_forward(x, w1, b1, w2, b2, *, block_b=256 * 1024):
    """Forward pass of the PyTorch `Adder` module.

    x:  (B, 2) float32
    w1: (10, 2) fc1.weight   b1: (10,) fc1.bias
    w2: (1, 10) fc2.weight   b2: (1,)  fc2.bias
    Returns (B, 1).
    """
    B = x.shape[0]

    # ---- tile plan (rows of 128 lanes) ----
    R = pl.cdiv(B, _LANE)                       # rows of 128 samples
    Rp = _SUB * pl.cdiv(R, _SUB)                # pad rows to sublane multiple
    tr = max(_SUB, min(block_b // _LANE, Rp))   # rows per tile (cap by block_b)
    tr = (tr // _SUB) * _SUB
    if tr >= Rp and Rp >= 2 * _SUB:
        # Force >= 2 grid steps so ("parallel",) uses both TensorCores on v7x.
        tr = _SUB * pl.cdiv(Rp // 2, _SUB)
    Rp = tr * pl.cdiv(Rp, tr)                   # rows padded to tile multiple
    bp = Rp * _LANE                             # padded batch
    grid = Rp // tr

    # ---- data prep: one pad + transpose into lane-dense feature planes ----
    xp = jnp.pad(x.astype(jnp.float32), ((0, bp - B), (0, 0)))   # (bp, 2)
    xt = xp.reshape(Rp, _LANE, 2).transpose(2, 0, 1)             # (2, Rp, 128)

    w1f = w1.reshape(2 * _HIDDEN).astype(jnp.float32)   # (20,)
    b1f = b1.reshape(_HIDDEN).astype(jnp.float32)       # (10,)
    w2f = w2.reshape(_HIDDEN).astype(jnp.float32)       # (10,) == fc2.weight.T
    b2f = b2.reshape(1).astype(jnp.float32)             # (1,)

    smem = pl.BlockSpec(memory_space=pltpu.MemorySpace.SMEM)

    out = pl.pallas_call(
        adder_kernel,
        out_shape=jax.ShapeDtypeStruct((Rp, _LANE), jnp.float32),
        grid=(grid,),
        in_specs=[
            pl.BlockSpec((2, tr, _LANE), lambda i: (0, i, 0)),  # x: streamed tiles
            smem, smem, smem, smem,                             # weights: SMEM scalars
        ],
        out_specs=pl.BlockSpec((tr, _LANE), lambda i: (i, 0)),
        compiler_params=pltpu.CompilerParams(
            dimension_semantics=("parallel",)),
    )(xt, w1f, b1f, w2f, b2f)

    return out.reshape(bp)[:B].reshape(B, 1).astype(x.dtype)


def init_params(key):
    """Deterministic init mirroring nn.Linear (PyTorch weight layout)."""
    k1, k2, k3, k4 = jax.random.split(key, 4)
    bound1 = 1.0 / jnp.sqrt(2.0)    # fan_in = 2
    bound2 = 1.0 / jnp.sqrt(10.0)   # fan_in = 10
    w1 = jax.random.uniform(k1, (10, 2), jnp.float32, -bound1, bound1)  # fc1.weight
    b1 = jax.random.uniform(k2, (10,), jnp.float32, -bound1, bound1)    # fc1.bias
    w2 = jax.random.uniform(k3, (1, 10), jnp.float32, -bound2, bound2)  # fc2.weight
    b2 = jax.random.uniform(k4, (1,), jnp.float32, -bound2, bound2)     # fc2.bias
    return w1, b1, w2, b2


def _ref(x, w1, b1, w2, b2):
    return jnp.maximum(x @ w1.T + b1, 0.0) @ w2.T + b2


if __name__ == "__main__":
    key = jax.random.PRNGKey(0)
    kx, kp = jax.random.split(key)
    w1, b1, w2, b2 = init_params(kp)

    # Primary small test (single tile, padded batch).
    batch = 8
    x = jax.random.normal(kx, (batch, 2), jnp.float32)
    out = adder_forward(x, w1, b1, w2, b2)
    jax.block_until_ready(out)
    assert out.shape == (batch, 1)
    assert jnp.allclose(out, _ref(x, w1, b1, w2, b2), atol=1e-5, rtol=1e-5)

    # Multi-tile path: B not a multiple of the tile, several grid steps.
    batch2 = 2500
    x2 = jax.random.normal(kx, (batch2, 2), jnp.float32)
    out2 = adder_forward(x2, w1, b1, w2, b2, block_b=1024)
    jax.block_until_ready(out2)
    assert out2.shape == (batch2, 1)
    assert jnp.allclose(out2, _ref(x2, w1, b1, w2, b2), atol=1e-5, rtol=1e-5)

    # Tile-halving path (grid forced to >= 2 steps for v7x megacore).
    batch3 = 4096
    x3 = jax.random.normal(kx, (batch3, 2), jnp.float32)
    out3 = adder_forward(x3, w1, b1, w2, b2)
    jax.block_until_ready(out3)
    assert out3.shape == (batch3, 1)
    assert jnp.allclose(out3, _ref(x3, w1, b1, w2, b2), atol=1e-5, rtol=1e-5)

    print("KERNEL_OK")
</pallas_src>

<mosaic_0001>
module attributes {stable_mosaic.version = 11 : i64} {
  func.func @adder_kernel(%arg0: i32, %arg1: memref<2x8x128xf32, #tpu.memory_space<vmem>>, %arg2: memref<20xf32, #tpu.memory_space<smem>>, %arg3: memref<10xf32, #tpu.memory_space<smem>>, %arg4: memref<10xf32, #tpu.memory_space<smem>>, %arg5: memref<1xf32, #tpu.memory_space<smem>>, %arg6: memref<8x128xf32, #tpu.memory_space<vmem>>) attributes {dimension_semantics = [#tpu.dimension_semantics<parallel>], iteration_bounds = array<i64: 1>, scalar_prefetch = 0 : i64, scratch_operands = 0 : i64, tpu.core_type = #tpu.core_type<tc>, window_params = [{transform_indices = @transform_0, window_bounds = array<i64: 2, 8, 128>}, {transform_indices = @transform_1, window_bounds = array<i64: 20>}, {transform_indices = @transform_2, window_bounds = array<i64: 10>}, {transform_indices = @transform_3, window_bounds = array<i64: 10>}, {transform_indices = @transform_4, window_bounds = array<i64: 1>}, {transform_indices = @transform_5, window_bounds = array<i64: 8, 128>}]} {
    %c0 = arith.constant 0 : index
    %c0_0 = arith.constant 0 : index
    %c0_1 = arith.constant 0 : index
    %0 = vector.load %arg1[%c0, %c0_0, %c0_1] : memref<2x8x128xf32, #tpu.memory_space<vmem>>, vector<1x8x128xf32>
    %1 = vector.shape_cast %0 : vector<1x8x128xf32> to vector<8x128xf32>
    %c1 = arith.constant 1 : index
    %c0_2 = arith.constant 0 : index
    %c0_3 = arith.constant 0 : index
    %2 = vector.load %arg1[%c1, %c0_2, %c0_3] : memref<2x8x128xf32, #tpu.memory_space<vmem>>, vector<1x8x128xf32>
    %3 = vector.shape_cast %2 : vector<1x8x128xf32> to vector<8x128xf32>
    %cst = arith.constant 0.000000e+00 : f32
    %4 = vector.broadcast %cst : f32 to vector<8x128xf32>
    %c0_4 = arith.constant 0 : index
    %5 = memref.load %arg2[%c0_4] : memref<20xf32, #tpu.memory_space<smem>>
    %6 = vector.broadcast %5 : f32 to vector<8x128xf32>
    %7 = arith.mulf %6, %1 : vector<8x128xf32>
    %c1_5 = arith.constant 1 : index
    %8 = memref.load %arg2[%c1_5] : memref<20xf32, #tpu.memory_space<smem>>
    %9 = vector.broadcast %8 : f32 to vector<8x128xf32>
    %10 = arith.mulf %9, %3 : vector<8x128xf32>
    %11 = arith.addf %7, %10 : vector<8x128xf32>
    %c0_6 = arith.constant 0 : index
    %12 = memref.load %arg3[%c0_6] : memref<10xf32, #tpu.memory_space<smem>>
    %13 = vector.broadcast %12 : f32 to vector<8x128xf32>
    %14 = arith.addf %11, %13 : vector<8x128xf32>
    %cst_7 = arith.constant 0.000000e+00 : f32
    %15 = vector.broadcast %cst_7 : f32 to vector<8x128xf32>
    %16 = arith.maximumf %14, %15 : vector<8x128xf32>
    %c0_8 = arith.constant 0 : index
    %17 = memref.load %arg4[%c0_8] : memref<10xf32, #tpu.memory_space<smem>>
    %18 = vector.broadcast %17 : f32 to vector<8x128xf32>
    %19 = arith.mulf %18, %16 : vector<8x128xf32>
    %20 = arith.addf %4, %19 : vector<8x128xf32>
    %c2 = arith.constant 2 : index
    %21 = memref.load %arg2[%c2] : memref<20xf32, #tpu.memory_space<smem>>
    %22 = vector.broadcast %21 : f32 to vector<8x128xf32>
    %23 = arith.mulf %22, %1 : vector<8x128xf32>
    %c3 = arith.constant 3 : index
    %24 = memref.load %arg2[%c3] : memref<20xf32, #tpu.memory_space<smem>>
    %25 = vector.broadcast %24 : f32 to vector<8x128xf32>
    %26 = arith.mulf %25, %3 : vector<8x128xf32>
    %27 = arith.addf %23, %26 : vector<8x128xf32>
    %c1_9 = arith.constant 1 : index
    %28 = memref.load %arg3[%c1_9] : memref<10xf32, #tpu.memory_space<smem>>
    %29 = vector.broadcast %28 : f32 to vector<8x128xf32>
    %30 = arith.addf %27, %29 : vector<8x128xf32>
    %cst_10 = arith.constant 0.000000e+00 : f32
    %31 = vector.broadcast %cst_10 : f32 to vector<8x128xf32>
    %32 = arith.maximumf %30, %31 : vector<8x128xf32>
    %c1_11 = arith.constant 1 : index
    %33 = memref.load %arg4[%c1_11] : memref<10xf32, #tpu.memory_space<smem>>
    %34 = vector.broadcast %33 : f32 to vector<8x128xf32>
    %35 = arith.mulf %34, %32 : vector<8x128xf32>
    %36 = arith.addf %20, %35 : vector<8x128xf32>
    %c4 = arith.constant 4 : index
    %37 = memref.load %arg2[%c4] : memref<20xf32, #tpu.memory_space<smem>>
    %38 = vector.broadcast %37 : f32 to vector<8x128xf32>
    %39 = arith.mulf %38, %1 : vector<8x128xf32>
    %c5 = arith.constant 5 : index
    %40 = memref.load %arg2[%c5] : memref<20xf32, #tpu.memory_space<smem>>
    %41 = vector.broadcast %40 : f32 to vector<8x128xf32>
    %42 = arith.mulf %41, %3 : vector<8x128xf32>
    %43 = arith.addf %39, %42 : vector<8x128xf32>
    %c2_12 = arith.constant 2 : index
    %44 = memref.load %arg3[%c2_12] : memref<10xf32, #tpu.memory_space<smem>>
    %45 = vector.broadcast %44 : f32 to vector<8x128xf32>
    %46 = arith.addf %43, %45 : vector<8x128xf32>
    %cst_13 = arith.constant 0.000000e+00 : f32
    %47 = vector.broadcast %cst_13 : f32 to vector<8x128xf32>
    %48 = arith.maximumf %46, %47 : vector<8x128xf32>
    %c2_14 = arith.constant 2 : index
    %49 = memref.load %arg4[%c2_14] : memref<10xf32, #tpu.memory_space<smem>>
    %50 = vector.broadcast %49 : f32 to vector<8x128xf32>
    %51 = arith.mulf %50, %48 : vector<8x128xf32>
    %52 = arith.addf %36, %51 : vector<8x128xf32>
    %c6 = arith.constant 6 : index
    %53 = memref.load %arg2[%c6] : memref<20xf32, #tpu.memory_space<smem>>
    %54 = vector.broadcast %53 : f32 to vector<8x128xf32>
    %55 = arith.mulf %54, %1 : vector<8x128xf32>
    %c7 = arith.constant 7 : index
    %56 = memref.load %arg2[%c7] : memref<20xf32, #tpu.memory_space<smem>>
    %57 = vector.broadcast %56 : f32 to vector<8x128xf32>
    %58 = arith.mulf %57, %3 : vector<8x128xf32>
    %59 = arith.addf %55, %58 : vector<8x128xf32>
    %c3_15 = arith.constant 3 : index
    %60 = memref.load %arg3[%c3_15] : memref<10xf32, #tpu.memory_space<smem>>
    %61 = vector.broadcast %60 : f32 to vector<8x128xf32>
    %62 = arith.addf %59, %61 : vector<8x128xf32>
    %cst_16 = arith.constant 0.000000e+00 : f32
    %63 = vector.broadcast %cst_16 : f32 to vector<8x128xf32>
    %64 = arith.maximumf %62, %63 : vector<8x128xf32>
    %c3_17 = arith.constant 3 : index
    %65 = memref.load %arg4[%c3_17] : memref<10xf32, #tpu.memory_space<smem>>
    %66 = vector.broadcast %65 : f32 to vector<8x128xf32>
    %67 = arith.mulf %66, %64 : vector<8x128xf32>
    %68 = arith.addf %52, %67 : vector<8x128xf32>
    %c8 = arith.constant 8 : index
    %69 = memref.load %arg2[%c8] : memref<20xf32, #tpu.memory_space<smem>>
    %70 = vector.broadcast %69 : f32 to vector<8x128xf32>
    %71 = arith.mulf %70, %1 : vector<8x128xf32>
    %c9 = arith.constant 9 : index
    %72 = memref.load %arg2[%c9] : memref<20xf32, #tpu.memory_space<smem>>
    %73 = vector.broadcast %72 : f32 to vector<8x128xf32>
    %74 = arith.mulf %73, %3 : vector<8x128xf32>
    %75 = arith.addf %71, %74 : vector<8x128xf32>
    %c4_18 = arith.constant 4 : index
    %76 = memref.load %arg3[%c4_18] : memref<10xf32, #tpu.memory_space<smem>>
    %77 = vector.broadcast %76 : f32 to vector<8x128xf32>
    %78 = arith.addf %75, %77 : vector<8x128xf32>
    %cst_19 = arith.constant 0.000000e+00 : f32
    %79 = vector.broadcast %cst_19 : f32 to vector<8x128xf32>
    %80 = arith.maximumf %78, %79 : vector<8x128xf32>
    %c4_20 = arith.constant 4 : index
    %81 = memref.load %arg4[%c4_20] : memref<10xf32, #tpu.memory_space<smem>>
    %82 = vector.broadcast %81 : f32 to vector<8x128xf32>
    %83 = arith.mulf %82, %80 : vector<8x128xf32>
    %84 = arith.addf %68, %83 : vector<8x128xf32>
    %c10 = arith.constant 10 : index
    %85 = memref.load %arg2[%c10] : memref<20xf32, #tpu.memory_space<smem>>
    %86 = vector.broadcast %85 : f32 to vector<8x128xf32>
    %87 = arith.mulf %86, %1 : vector<8x128xf32>
    %c11 = arith.constant 11 : index
    %88 = memref.load %arg2[%c11] : memref<20xf32, #tpu.memory_space<smem>>
    %89 = vector.broadcast %88 : f32 to vector<8x128xf32>
    %90 = arith.mulf %89, %3 : vector<8x128xf32>
    %91 = arith.addf %87, %90 : vector<8x128xf32>
    %c5_21 = arith.constant 5 : index
    %92 = memref.load %arg3[%c5_21] : memref<10xf32, #tpu.memory_space<smem>>
    %93 = vector.broadcast %92 : f32 to vector<8x128xf32>
    %94 = arith.addf %91, %93 : vector<8x128xf32>
    %cst_22 = arith.constant 0.000000e+00 : f32
    %95 = vector.broadcast %cst_22 : f32 to vector<8x128xf32>
    %96 = arith.maximumf %94, %95 : vector<8x128xf32>
    %c5_23 = arith.constant 5 : index
    %97 = memref.load %arg4[%c5_23] : memref<10xf32, #tpu.memory_space<smem>>
    %98 = vector.broadcast %97 : f32 to vector<8x128xf32>
    %99 = arith.mulf %98, %96 : vector<8x128xf32>
    %100 = arith.addf %84, %99 : vector<8x128xf32>
    %c12 = arith.constant 12 : index
    %101 = memref.load %arg2[%c12] : memref<20xf32, #tpu.memory_space<smem>>
    %102 = vector.broadcast %101 : f32 to vector<8x128xf32>
    %103 = arith.mulf %102, %1 : vector<8x128xf32>
    %c13 = arith.constant 13 : index
    %104 = memref.load %arg2[%c13] : memref<20xf32, #tpu.memory_space<smem>>
    %105 = vector.broadcast %104 : f32 to vector<8x128xf32>
    %106 = arith.mulf %105, %3 : vector<8x128xf32>
    %107 = arith.addf %103, %106 : vector<8x128xf32>
    %c6_24 = arith.constant 6 : index
    %108 = memref.load %arg3[%c6_24] : memref<10xf32, #tpu.memory_space<smem>>
    %109 = vector.broadcast %108 : f32 to vector<8x128xf32>
    %110 = arith.addf %107, %109 : vector<8x128xf32>
    %cst_25 = arith.constant 0.000000e+00 : f32
    %111 = vector.broadcast %cst_25 : f32 to vector<8x128xf32>
    %112 = arith.maximumf %110, %111 : vector<8x128xf32>
    %c6_26 = arith.constant 6 : index
    %113 = memref.load %arg4[%c6_26] : memref<10xf32, #tpu.memory_space<smem>>
    %114 = vector.broadcast %113 : f32 to vector<8x128xf32>
    %115 = arith.mulf %114, %112 : vector<8x128xf32>
    %116 = arith.addf %100, %115 : vector<8x128xf32>
    %c14 = arith.constant 14 : index
    %117 = memref.load %arg2[%c14] : memref<20xf32, #tpu.memory_space<smem>>
    %118 = vector.broadcast %117 : f32 to vector<8x128xf32>
    %119 = arith.mulf %118, %1 : vector<8x128xf32>
    %c15 = arith.constant 15 : index
    %120 = memref.load %arg2[%c15] : memref<20xf32, #tpu.memory_space<smem>>
    %121 = vector.broadcast %120 : f32 to vector<8x128xf32>
    %122 = arith.mulf %121, %3 : vector<8x128xf32>
    %123 = arith.addf %119, %122 : vector<8x128xf32>
    %c7_27 = arith.constant 7 : index
    %124 = memref.load %arg3[%c7_27] : memref<10xf32, #tpu.memory_space<smem>>
    %125 = vector.broadcast %124 : f32 to vector<8x128xf32>
    %126 = arith.addf %123, %125 : vector<8x128xf32>
    %cst_28 = arith.constant 0.000000e+00 : f32
    %127 = vector.broadcast %cst_28 : f32 to vector<8x128xf32>
    %128 = arith.maximumf %126, %127 : vector<8x128xf32>
    %c7_29 = arith.constant 7 : index
    %129 = memref.load %arg4[%c7_29] : memref<10xf32, #tpu.memory_space<smem>>
    %130 = vector.broadcast %129 : f32 to vector<8x128xf32>
    %131 = arith.mulf %130, %128 : vector<8x128xf32>
    %132 = arith.addf %116, %131 : vector<8x128xf32>
    %c16 = arith.constant 16 : index
    %133 = memref.load %arg2[%c16] : memref<20xf32, #tpu.memory_space<smem>>
    %134 = vector.broadcast %133 : f32 to vector<8x128xf32>
    %135 = arith.mulf %134, %1 : vector<8x128xf32>
    %c17 = arith.constant 17 : index
    %136 = memref.load %arg2[%c17] : memref<20xf32, #tpu.memory_space<smem>>
    %137 = vector.broadcast %136 : f32 to vector<8x128xf32>
    %138 = arith.mulf %137, %3 : vector<8x128xf32>
    %139 = arith.addf %135, %138 : vector<8x128xf32>
    %c8_30 = arith.constant 8 : index
    %140 = memref.load %arg3[%c8_30] : memref<10xf32, #tpu.memory_space<smem>>
    %141 = vector.broadcast %140 : f32 to vector<8x128xf32>
    %142 = arith.addf %139, %141 : vector<8x128xf32>
    %cst_31 = arith.constant 0.000000e+00 : f32
    %143 = vector.broadcast %cst_31 : f32 to vector<8x128xf32>
    %144 = arith.maximumf %142, %143 : vector<8x128xf32>
    %c8_32 = arith.constant 8 : index
    %145 = memref.load %arg4[%c8_32] : memref<10xf32, #tpu.memory_space<smem>>
    %146 = vector.broadcast %145 : f32 to vector<8x128xf32>
    %147 = arith.mulf %146, %144 : vector<8x128xf32>
    %148 = arith.addf %132, %147 : vector<8x128xf32>
    %c18 = arith.constant 18 : index
    %149 = memref.load %arg2[%c18] : memref<20xf32, #tpu.memory_space<smem>>
    %150 = vector.broadcast %149 : f32 to vector<8x128xf32>
    %151 = arith.mulf %150, %1 : vector<8x128xf32>
    %c19 = arith.constant 19 : index
    %152 = memref.load %arg2[%c19] : memref<20xf32, #tpu.memory_space<smem>>
    %153 = vector.broadcast %152 : f32 to vector<8x128xf32>
    %154 = arith.mulf %153, %3 : vector<8x128xf32>
    %155 = arith.addf %151, %154 : vector<8x128xf32>
    %c9_33 = arith.constant 9 : index
    %156 = memref.load %arg3[%c9_33] : memref<10xf32, #tpu.memory_space<smem>>
    %157 = vector.broadcast %156 : f32 to vector<8x128xf32>
    %158 = arith.addf %155, %157 : vector<8x128xf32>
    %cst_34 = arith.constant 0.000000e+00 : f32
    %159 = vector.broadcast %cst_34 : f32 to vector<8x128xf32>
    %160 = arith.maximumf %158, %159 : vector<8x128xf32>
    %c9_35 = arith.constant 9 : index
    %161 = memref.load %arg4[%c9_35] : memref<10xf32, #tpu.memory_space<smem>>
    %162 = vector.broadcast %161 : f32 to vector<8x128xf32>
    %163 = arith.mulf %162, %160 : vector<8x128xf32>
    %164 = arith.addf %148, %163 : vector<8x128xf32>
    %c0_36 = arith.constant 0 : index
    %165 = memref.load %arg5[%c0_36] : memref<1xf32, #tpu.memory_space<smem>>
    %166 = vector.broadcast %165 : f32 to vector<8x128xf32>
    %167 = arith.addf %164, %166 : vector<8x128xf32>
    %c0_37 = arith.constant 0 : index
    %c0_38 = arith.constant 0 : index
    %168 = vector.load %arg6[%c0_37, %c0_38] : memref<8x128xf32, #tpu.memory_space<vmem>>, vector<8x128xf32>
    tpu.vector_store %arg6[%c0_37, %c0_38], %167 {strides = array<i32>} : memref<8x128xf32, #tpu.memory_space<vmem>>, vector<8x128xf32>,
    return
  }
  func.func @transform_0(%arg0: i32) -> (i32, i32, i32) {
    %c0_i32 = arith.constant 0 : i32
    %c0_i32_0 = arith.constant 0 : i32
    %c0_i32_1 = arith.constant 0 : i32
    return %c0_i32, %arg0, %c0_i32_0 : i32, i32, i32
  }
  func.func @transform_1(%arg0: i32) -> i32 {
    %c0_i32 = arith.constant 0 : i32
    %c0_i32_0 = arith.constant 0 : i32
    return %c0_i32 : i32
  }
  func.func @transform_2(%arg0: i32) -> i32 {
    %c0_i32 = arith.constant 0 : i32
    %c0_i32_0 = arith.constant 0 : i32
    return %c0_i32 : i32
  }
  func.func @transform_3(%arg0: i32) -> i32 {
    %c0_i32 = arith.constant 0 : i32
    %c0_i32_0 = arith.constant 0 : i32
    return %c0_i32 : i32
  }
  func.func @transform_4(%arg0: i32) -> i32 {
    %c0_i32 = arith.constant 0 : i32
    %c0_i32_0 = arith.constant 0 : i32
    return %c0_i32 : i32
  }
  func.func @transform_5(%arg0: i32) -> (i32, i32) {
    %c0_i32 = arith.constant 0 : i32
    %c0_i32_0 = arith.constant 0 : i32
    return %arg0, %c0_i32 : i32, i32
  }
}

</mosaic_0001>

<bundles_post_ra>
// kernel: tpu_custom_call.1
= control target key start
LH: loop header
LB: loop body
LE: loop exit
PB: predicated region body
PF: predicated region fallthrough
CT: control target
= control target key end

     0   :  { %11 = vsyncpa [#allocation4], 0  ;;  %s501_s0 = inlined_call_operand.hbm [shape: f32[2,8,128], index: 0, kind: input, shape index: {}]   ;;  %s502_s1 = inlined_call_operand.vmem [shape: f32[20], index: 1, kind: input, shape index: {}]   ;;  %s503_s2 = inlined_call_operand.vmem [shape: f32[10], index: 2, kind: input, shape index: {}]   ;;  %s504_s3 = inlined_call_operand.vmem [shape: f32[10], index: 3, kind: input, shape index: {}]   ;;  %s505_s4 = inlined_call_operand.<no memory space> [shape: f32[1], index: 4, kind: input, shape index: {}]   ;;  %s506_s5 = inlined_call_operand.hbm [shape: f32[8,128], index: 5, kind: output, shape index: {}]  }
   0x1   :  { %12 = vsyncpa [#allocation6], 0 }
   0x2   :  { %13 = vsyncpa [#allocation9], 0  ;;  %s43_s20 = sshll.u32 %s503_s2, 4  ;;  %s44_s20 = int_to_ptr.vmem [resolvable:$true] %s43_s20 }
   0x3   :  { %14 = vsyncpa [#allocation5], 0  ;;  %s290_s21 = scalar_lea.vmem %s44_s20, 16  ;;  %p295_p1 = scmp.lt.s32.totalorder %s44_s20, %s44_s20 }
   0x4   :  { %p291_p0 = scmp.ne.s32.totalorder %s44_s20, %s290_s21  ;;  %p296_p2 = scmp.lt.s32.totalorder %s290_s21, %s290_s21 }
   0x6   :  { %p297_p3 = por %p296_p2, %p295_p1 }
   0x8   :  { %p298_p4 = pnand %p297_p3, %p291_p0 }
   0xa   :  { %301 = shalt.err (!%p298_p4)
}
   0xb   :  { %s374_s22 = smov [#allocation8]   ;;  %s375_s23 = smov [#allocation3]  }
   0xc   :  { %46 = dma.vmem_to_smem %s44_s20, 16, %s374_s22, [#allocation9]  }
   0xd   :  { %s20_s24 = sshll.u32 %s375_s23, 4  ;;  %s21_s24 = int_to_ptr.vmem [resolvable:$true] %s20_s24 }
   0xe   :  { %s310_s25 = scalar_lea.vmem %s21_s24, 256  ;;  %p315_p6 = scmp.lt.s32.totalorder %s21_s24, %s21_s24 }
   0xf   :  { %p311_p5 = scmp.ne.s32.totalorder %s21_s24, %s310_s25  ;;  %p316_p7 = scmp.lt.s32.totalorder %s310_s25, %s310_s25 }
  0x11   :  { %p317_p8 = por %p316_p7, %p315_p6 }
  0x13   :  { %p318_p9 = pnand %p317_p8, %p311_p5 }
  0x15   :  { %321 = shalt.err (!%p318_p9)
}
  0x16   :  { %s376_s2 = smov 128   ;;  %s377_s26 = smov 8  }
  0x17   :  { %26 = dma.hbm_to_vmem [thread:$0]  %s501_s0, 256, %s21_s24, [#allocation4], %s376_s2, %s376_s2, %s377_s26  }
  0x18   :  { %s33_s6 = sshll.u32 %s502_s1, 4  ;;  %s53_s9 = sshll.u32 %s504_s3, 4  ;;  %s34_s6 = int_to_ptr.vmem [resolvable:$true] %s33_s6  ;;  %s54_s9 = int_to_ptr.vmem [resolvable:$true] %s53_s9 }
  0x19   :  { %s322_s10 = scalar_lea.vmem %s34_s6, 16  ;;  %p327_p11 = scmp.lt.s32.totalorder %s34_s6, %s34_s6 }
  0x1a   :  { %p323_p10 = scmp.ne.s32.totalorder %s34_s6, %s322_s10  ;;  %p328_p12 = scmp.lt.s32.totalorder %s322_s10, %s322_s10 }
  0x1c   :  { %p329_p13 = por %p328_p12, %p327_p11 }
  0x1e   :  { %p330_p0 = pnand %p329_p13, %p323_p10 }
  0x20   :  { %333 = shalt.err (!%p330_p0)
}
  0x21   :  { %s378_s11 = smov [#allocation7]   ;;  %s334_s0 = scalar_lea.vmem %s54_s9, 16 }
  0x22   :  { %36 = dma.vmem_to_smem %s34_s6, 16, %s378_s11, [#allocation6]  }
  0x23   :  { %p335_p1 = scmp.ne.s32.totalorder %s54_s9, %s334_s0  ;;  %p339_p2 = scmp.lt.s32.totalorder %s54_s9, %s54_s9 }
  0x24   :  { %p340_p3 = scmp.lt.s32.totalorder %s334_s0, %s334_s0 }
  0x26   :  { %p341_p4 = por %p340_p3, %p339_p2 }
  0x28   :  { %p342_p5 = pnand %p341_p4, %p335_p1 }
  0x2a   :  { %345 = shalt.err (!%p342_p5)
}
  0x2b   :  { %s379_s1 = smov [#allocation10]  }
  0x2c   :  { %56 = dma.vmem_to_smem %s54_s9, 16, %s379_s1, [#allocation9]  }
  0x2d   :  { %366 = dma.done.wait [#allocation4], 256  }
  0x2e   :  { %367 = vsyncadd [#allocation4], 4294967040 }
  0x2f   :  { %368 = dma.done.wait [#allocation6], 16  }
  0x30   :  { %369 = vsyncadd [#allocation6], 4294967280 }
  0x31   :  { %370 = dma.done.wait [#allocation9], 32  }
  0x32   :  { %371 = vsyncadd [#allocation9], 4294967264 }
  0x33   :  { %71 = sfence }
  0x34   :  { %s75_s3 = sld [smem:[#allocation7]]  ;;  %v425_v0 = vld [vmem:[#allocation3] sm:$0xff]  ;;  %v427_v1 = vld [vmem:[#allocation3 + $0x8] sm:$0xff] }
  0x35   :  { %s246_s12 = sld [smem:[#allocation7 + $0x1]] }
  0x36   :  { %s82_s13 = sld [smem:[#allocation8]] }
  0x37   :  { %s423_s14 = sld [smem:[#allocation10]] }
  0x38   :  { %s247_s15 = sld [smem:[#allocation7 + $0x2]] }
  0x39   :  { %s248_s16 = sld [smem:[#allocation7 + $0x3]] }
  0x3a   :  { %v76_v2 = vstv %s75_s3  ;;  %s249_s17 = sld [smem:[#allocation8 + $0x1]] }
  0x3b   :  { %v77_v3 = vmul.f32 %v76_v2, %v425_v0  ;;  %v79_v4 = vstv %s246_s12  ;;  %s430_s18 = sld [smem:[#allocation10 + $0x1]] }
  0x3c   :  { %v80_v5 = vmul.f32 %v79_v4, %v427_v1  ;;  %s251_s19 = sld [smem:[#allocation7 + $0x4]]  ;;  %v83_v6 = vstv %s82_s13 }
  0x3d   :  { %s252_s20 = sld [smem:[#allocation7 + $0x5]]  ;;  %v87_v17 = vstv %s423_s14 }
  0x3e   :  { %v81_v7 = vadd.f32 %v80_v5, %v77_v3  ;;  %v91_v8 = vstv %s247_s15  ;;  %s433_s21 = sld [smem:[#allocation8 + $0x2]] }
  0x3f   :  { %v92_v9 = vmul.f32 %v91_v8, %v425_v0  ;;  %v94_v10 = vstv %s248_s16  ;;  %s436_s22 = sld [smem:[#allocation10 + $0x2]] }
  0x40   :  { %v84_v11 = vadd.f32 %v83_v6, %v81_v7  ;;  %v95_v12 = vmul.f32 %v94_v10, %v427_v1  ;;  %s255_s23 = sld [smem:[#allocation7 + $0x6]]  ;;  %v98_v13 = vstv %s249_s17 }
  0x41   :  { %s256_s24 = sld [smem:[#allocation7 + $0x7]]  ;;  %v102_v22 = vstv %s430_s18 }
  0x42   :  { %v85_v14 = vmax.f32 %v84_v11, 0.0  ;;  %v96_v15 = vadd.f32 %v95_v12, %v92_v9  ;;  %v106_v16 = vstv %s251_s19  ;;  %s439_s25 = sld [smem:[#allocation8 + $0x3]] }
  0x43   :  { %v107_v18 = vmul.f32 %v106_v16, %v425_v0  ;;  %v109_v19 = vstv %s252_s20  ;;  %s443_s2 = sld [smem:[#allocation10 + $0x3]] }
  0x44   :  { %v99_v20 = vadd.f32 %v98_v13, %v96_v15  ;;  %v110_v21 = vmul.f32 %v109_v19, %v427_v1  ;;  %s259_s26 = sld [smem:[#allocation7 + $0x8]]  ;;  %v113_v23 = vstv %s433_s21  ;;  %v88_v24 = vmul.f32 %v87_v17, %v85_v14 }
  0x45   :  { %s260_s27 = sld [smem:[#allocation7 + $0x9]]  ;;  %v117_v33 = vstv %s436_s22 }
  0x46   :  { %v100_v25 = vmax.f32 %v99_v20, 0.0  ;;  %v111_v26 = vadd.f32 %v110_v21, %v107_v18  ;;  %v121_v27 = vstv %s255_s23  ;;  %s448_s28 = sld [smem:[#allocation8 + $0x4]] }
  0x47   :  { %v122_v28 = vmul.f32 %v121_v27, %v425_v0  ;;  %v124_v29 = vstv %s256_s24  ;;  %s451_s29 = sld [smem:[#allocation10 + $0x4]]  ;;  %s380_s24 = smov [#allocation11]  }
  0x48   :  { %v103_v30 = vmul.f32 %v102_v22, %v100_v25  ;;  %v114_v31 = vadd.f32 %v113_v23, %v111_v26  ;;  %v125_v32 = vmul.f32 %v124_v29, %v427_v1  ;;  %s263_s30 = sld [smem:[#allocation7 + $0xa]]  ;;  %v128_v34 = vstv %s439_s25  ;;  %s235_s25 = sshll.u32 %s380_s24, 4  ;;  %s236_s25 = int_to_ptr.vmem [resolvable:$true] %s235_s25 }
  0x49   :  { %s264_s6 = sld [smem:[#allocation7 + $0xb]]  ;;  %v132_v44 = vstv %s443_s2  ;;  %s346_s2 = scalar_lea.vmem %s236_s25, 128 }
  0x4a   :  { %v104_v35 = vadd.f32 %v103_v30, %v88_v24  ;;  %v115_v36 = vmax.f32 %v114_v31, 0.0  ;;  %v126_v37 = vadd.f32 %v125_v32, %v122_v28  ;;  %v136_v38 = vstv %s259_s26  ;;  %s456_s7 = sld [smem:[#allocation8 + $0x5]]  ;;  %p347_p6 = scmp.ne.s32.totalorder %s236_s25, %s346_s2 }
  0x4b   :  { %v137_v39 = vmul.f32 %v136_v38, %v425_v0  ;;  %v139_v40 = vstv %s260_s27  ;;  %s459_s8 = sld [smem:[#allocation10 + $0x5]]  ;;  %p351_p7 = scmp.lt.s32.totalorder %s236_s25, %s236_s25 }
  0x4c   :  { %v118_v41 = vmul.f32 %v117_v33, %v115_v36  ;;  %v129_v42 = vadd.f32 %v128_v34, %v126_v37  ;;  %v140_v43 = vmul.f32 %v139_v40, %v427_v1  ;;  %s267_s9 = sld [smem:[#allocation7 + $0xc]]  ;;  %v143_v45 = vstv %s448_s28  ;;  %p352_p8 = scmp.lt.s32.totalorder %s346_s2, %s346_s2 }
  0x4d   :  { %s268_s10 = sld [smem:[#allocation7 + $0xd]]  ;;  %v147_v55 = vstv %s451_s29 }
  0x4e   :  { %v119_v46 = vadd.f32 %v118_v41, %v104_v35  ;;  %v130_v47 = vmax.f32 %v129_v42, 0.0  ;;  %v141_v48 = vadd.f32 %v140_v43, %v137_v39  ;;  %v151_v49 = vstv %s263_s30  ;;  %s464_s11 = sld [smem:[#allocation8 + $0x6]]  ;;  %p353_p9 = por %p352_p8, %p351_p7 }
  0x4f   :  { %v152_v50 = vmul.f32 %v151_v49, %v425_v0  ;;  %v154_v51 = vstv %s264_s6  ;;  %s467_s0 = sld [smem:[#allocation10 + $0x6]] }
  0x50   :  { %v133_v52 = vmul.f32 %v132_v44, %v130_v47  ;;  %v144_v53 = vadd.f32 %v143_v45, %v141_v48  ;;  %v155_v54 = vmul.f32 %v154_v51, %v427_v1  ;;  %s271_s1 = sld [smem:[#allocation7 + $0xe]]  ;;  %v158_v56 = vstv %s456_s7  ;;  %p354_p10 = pnand %p353_p9, %p347_p6 }
  0x51   :  { %s272_s3 = sld [smem:[#allocation7 + $0xf]]  ;;  %v162_v4 = vstv %s459_s8 }
  0x52   :  { %v134_v57 = vadd.f32 %v133_v52, %v119_v46  ;;  %v145_v58 = vmax.f32 %v144_v53, 0.0  ;;  %v156_v59 = vadd.f32 %v155_v54, %v152_v50  ;;  %v166_v60 = vstv %s267_s9  ;;  %s472_s12 = sld [smem:[#allocation8 + $0x7]] }
  0x53   :  { %v167_v61 = vmul.f32 %v166_v60, %v425_v0  ;;  %v169_v62 = vstv %s268_s10  ;;  %s475_s13 = sld [smem:[#allocation10 + $0x7]] }
  0x54   :  { %v148_v63 = vmul.f32 %v147_v55, %v145_v58  ;;  %v159_v2 = vadd.f32 %v158_v56, %v156_v59  ;;  %v170_v3 = vmul.f32 %v169_v62, %v427_v1  ;;  %s275_s14 = sld [smem:[#allocation7 + $0x10]]  ;;  %v173_v5 = vstv %s464_s11 }
  0x55   :  { %s276_s15 = sld [smem:[#allocation7 + $0x11]]  ;;  %v177_v15 = vstv %s467_s0 }
  0x56   :  { %v149_v6 = vadd.f32 %v148_v63, %v134_v57  ;;  %v160_v7 = vmax.f32 %v159_v2, 0.0  ;;  %v171_v8 = vadd.f32 %v170_v3, %v167_v61  ;;  %v181_v9 = vstv %s271_s1  ;;  %s480_s16 = sld [smem:[#allocation8 + $0x8]] }
  0x57   :  { %v182_v10 = vmul.f32 %v181_v9, %v425_v0  ;;  %v184_v11 = vstv %s272_s3  ;;  %s483_s17 = sld [smem:[#allocation10 + $0x8]] }
  0x58   :  { %v163_v12 = vmul.f32 %v162_v4, %v160_v7  ;;  %v174_v13 = vadd.f32 %v173_v5, %v171_v8  ;;  %v185_v14 = vmul.f32 %v184_v11, %v427_v1  ;;  %s279_s18 = sld [smem:[#allocation7 + $0x12]]  ;;  %v188_v16 = vstv %s472_s12 }
  0x59   :  { %s280_s19 = sld [smem:[#allocation7 + $0x13]]  ;;  %v192_v26 = vstv %s475_s13 }
  0x5a   :  { %v164_v17 = vadd.f32 %v163_v12, %v149_v6  ;;  %v175_v18 = vmax.f32 %v174_v13, 0.0  ;;  %v186_v19 = vadd.f32 %v185_v14, %v182_v10  ;;  %v196_v20 = vstv %s275_s14  ;;  %s281_s20 = sld [smem:[#allocation8 + $0x9]] }
  0x5b   :  { %v197_v21 = vmul.f32 %v196_v20, %v425_v0  ;;  %v199_v22 = vstv %s276_s15  ;;  %s282_s21 = sld [smem:[#allocation10 + $0x9]] }
  0x5c   :  { %v178_v23 = vmul.f32 %v177_v15, %v175_v18  ;;  %v189_v24 = vadd.f32 %v188_v16, %v186_v19  ;;  %v200_v25 = vmul.f32 %v199_v22, %v427_v1  ;;  %v203_v27 = vstv %s480_s16 }
  0x5d   :  { %v207_v37 = vstv %s483_s17 }
  0x5e   :  { %v179_v28 = vadd.f32 %v178_v23, %v164_v17  ;;  %v190_v29 = vmax.f32 %v189_v24, 0.0  ;;  %v201_v30 = vadd.f32 %v200_v25, %v197_v21  ;;  %v211_v31 = vstv %s279_s18 }
  0x5f   :  { %v212_v32 = vmul.f32 %v211_v31, %v425_v0  ;;  %v214_v33 = vstv %s280_s19  ;;  %v226_v0 = vstv %s505_s4 }
  0x60   :  { %v193_v34 = vmul.f32 %v192_v26, %v190_v29  ;;  %v204_v35 = vadd.f32 %v203_v27, %v201_v30  ;;  %v215_v36 = vmul.f32 %v214_v33, %v427_v1  ;;  %v218_v38 = vstv %s281_s20 }
  0x61   :  { %v222_v44 = vstv %s282_s21 }
  0x62   :  { %v194_v39 = vadd.f32 %v193_v34, %v179_v28  ;;  %v205_v40 = vmax.f32 %v204_v35, 0.0  ;;  %v216_v41 = vadd.f32 %v215_v36, %v212_v32 }
  0x64   :  { %v208_v42 = vmul.f32 %v207_v37, %v205_v40  ;;  %v219_v43 = vadd.f32 %v218_v38, %v216_v41 }
  0x66   :  { %v209_v45 = vadd.f32 %v208_v42, %v194_v39  ;;  %v220_v46 = vmax.f32 %v219_v43, 0.0 }
  0x68   :  { %v223_v47 = vmul.f32 %v222_v44, %v220_v46 }
  0x6a   :  { %v224_v48 = vadd.f32 %v223_v47, %v209_v45 }
  0x6c   :  { %v227_v49 = vadd.f32 %v226_v0, %v224_v48 }
  0x6e   :  { %228 = vst [vmem:[#allocation11] sm:$0xff] %v227_v49 }
  0x6f   :  { %357 = shalt.err (!%p354_p10)
}
  0x70   :  { %238 = dma.vmem_to_hbm [thread:$0]  %s236_s25, 128, %s506_s5, [#allocation5]  }
  0x71   :  { %372 = dma.done.wait [#allocation5], 128  }
  0x72   :  { %373 = vsyncadd [#allocation5], 4294967168 }
  0x73   :  { %242 = vsyncpa [#allocation4], 1 }
  0x74   :  { %243 = vsyncpa [#allocation5], 1 }
  0x75   :  { %244 = vsyncpa [#allocation6], 1 }
  0x76   :  { %245 = vsyncpa [#allocation9], 1 }

</bundles_post_ra>
